<compile_context>
chip_gen: v7x
topology: tpu7x:2x2x1
jax: 0.10.0
libtpu: 0.0.40
codegen_flags: <defaults>
</compile_context>

<pallas_src>
import functools

import jax
import jax.numpy as jnp
from jax.experimental import pallas as pl
from jax.experimental.pallas import tpu as pltpu


def ts_kernel(temp_ref, x_ref, tok_ref, o_ref, m_ref, s_ref, num_ref, *, tv, v):
    # temp_ref: SMEM (1,1) f32; x_ref: VMEM (TN,TV); tok_ref: VMEM (TN,1) i32
    # o_ref: VMEM (TN,1) f32 (resident across the V grid axis)
    # m_ref/s_ref/num_ref: VMEM (TN,1) f32 scratch (running max / sum / numerator)
    j = pl.program_id(1)

    # One scalar reciprocal instead of a per-element vector divide.
    inv_t = 1.0 / temp_ref[0, 0]

    @pl.when(j == 0)
    def _init():
        m_ref[...] = jnp.full_like(m_ref, -jnp.inf)
        s_ref[...] = jnp.zeros_like(s_ref)
        num_ref[...] = jnp.zeros_like(num_ref)

    # Upcast (no-op for f32, supports bf16 logits) and apply temperature.
    x = x_ref[...].astype(jnp.float32) * inv_t                       # (TN, TV)

    # Global column ids for this V-block (token gather + ragged-tail masking).
    col = j * tv + jax.lax.broadcasted_iota(jnp.int32, x.shape, 1)   # (TN, TV)
    if v % tv != 0:
        # Mask the out-of-range tail of the last V block so it contributes
        # nothing to the max / sum / gather.
        x = jnp.where(col < v, x, jnp.finfo(jnp.float32).min)

    # Online softmax statistics along the class (lane) axis.
    m_prev = m_ref[...]
    m_new = jnp.maximum(m_prev, jnp.max(x, axis=-1, keepdims=True))
    alpha = jnp.exp(m_prev - m_new)                                   # rescale old stats
    e = jnp.exp(x - m_new)                                            # (TN, TV) -> EUP

    # Gather numerator at the token column: iota compare + masked row-sum.
    hit = col == tok_ref[...]                                         # (TN,1) -> (TN,TV)
    s_ref[...] = alpha * s_ref[...] + jnp.sum(e, axis=-1, keepdims=True)
    num_ref[...] = alpha * num_ref[...] + jnp.sum(
        jnp.where(hit, e, 0.0), axis=-1, keepdims=True)
    m_ref[...] = m_new

    @pl.when(j == pl.num_programs(1) - 1)
    def _finalize():
        # Only TN values written once per batch tile; exact divide is free here.
        o_ref[...] = num_ref[...] / s_ref[...]


def _pick_tiles(N, V):
    """Heuristic tile sizes: keep logits double-buffers ~<= 8 MiB (safe on v7x 64 MiB)."""
    SUB = 8
    tv = V if V <= 2048 else 2048                 # whole V when modest, else 2048-lane slabs
    budget = 8 * 1024 * 1024                      # bytes for 2 * TN * TV * 4
    tn = budget // (2 * tv * 4)
    tn = max(SUB, min(512, (tn // SUB) * SUB))
    if N < SUB:
        tn = N                                    # full-dim block is always legal
    else:
        tn = min(tn, ((N + SUB - 1) // SUB) * SUB)
    return tn, tv


def ts_model_forward(x, tokens, temperature, *, tn=None, tv=None):
    """TSModel forward: softmax(x / T, axis=1) gathered at `tokens` per row.

    x: [N, V] float32/bfloat16 logits; tokens: [N] int; temperature: scalar.
    Returns [N] float32.
    """
    N, V = x.shape
    auto_tn, auto_tv = _pick_tiles(N, V)
    tn = auto_tn if tn is None else tn
    tv = auto_tv if tv is None else tv

    temp = jnp.asarray(temperature, jnp.float32).reshape(1, 1)
    tok2d = tokens.astype(jnp.int32).reshape(N, 1)

    grid = (pl.cdiv(N, tn), pl.cdiv(V, tv))
    kernel = functools.partial(ts_kernel, tv=tv, v=V)

    out = pl.pallas_call(
        kernel,
        out_shape=jax.ShapeDtypeStruct((N, 1), jnp.float32),
        grid=grid,
        in_specs=[
            pl.BlockSpec(memory_space=pltpu.MemorySpace.SMEM),   # temperature scalar
            pl.BlockSpec((tn, tv), lambda i, j: (i, j)),         # logits tile (pipelined)
            pl.BlockSpec((tn, 1), lambda i, j: (i, 0)),          # tokens: constant over V axis
        ],
        out_specs=pl.BlockSpec((tn, 1), lambda i, j: (i, 0)),    # resident over V axis
        scratch_shapes=[
            pltpu.VMEM((tn, 1), jnp.float32),   # running max  m
            pltpu.VMEM((tn, 1), jnp.float32),   # running sum  s
            pltpu.VMEM((tn, 1), jnp.float32),   # gathered numerator
        ],
        compiler_params=pltpu.CompilerParams(
            dimension_semantics=("parallel", "arbitrary"),
            vmem_limit_bytes=32 * 1024 * 1024,
        ),
    )(temp, x, tok2d)
    return out[:, 0]                                             # squeeze(1)


if __name__ == "__main__":
    key = jax.random.PRNGKey(0)
    kx, kt = jax.random.split(key)

    # Small shapes, but tiles chosen to exercise the 2x2 grid (N and V tiling).
    N, V = 16, 256
    x = jax.random.normal(kx, (N, V), dtype=jnp.float32)
    tokens = jax.random.randint(kt, (N,), 0, V, dtype=jnp.int32)
    temperature = jnp.ones((1,), jnp.float32)     # nn.Parameter(torch.ones(1)) init

    out = ts_model_forward(x, tokens, temperature[0], tn=8, tv=128)
    out = jax.block_until_ready(out)

    ref = jax.nn.softmax(x / temperature[0], axis=1)[jnp.arange(N), tokens]
    assert out.shape == (N,)
    assert jnp.allclose(out, ref, atol=1e-5, rtol=1e-5), (out, ref)

    # Ragged V (last V block only partially valid) + non-unit temperature.
    N2, V2 = 16, 200
    x2 = jax.random.normal(jax.random.PRNGKey(1), (N2, V2), dtype=jnp.float32)
    tok2 = jax.random.randint(jax.random.PRNGKey(2), (N2,), 0, V2, dtype=jnp.int32)
    t2 = jnp.asarray(1.7, jnp.float32)
    out2 = jax.block_until_ready(ts_model_forward(x2, tok2, t2, tn=8, tv=128))
    ref2 = jax.nn.softmax(x2 / t2, axis=1)[jnp.arange(N2), tok2]
    assert jnp.allclose(out2, ref2, atol=1e-5, rtol=1e-5), (out2, ref2)

    # Auto-tiled path (ragged batch tile + whole-V block), bf16 logits.
    N3, V3 = 12, 512
    x3 = jax.random.normal(jax.random.PRNGKey(3), (N3, V3), dtype=jnp.bfloat16)
    tok3 = jax.random.randint(jax.random.PRNGKey(4), (N3,), 0, V3, dtype=jnp.int32)
    t3 = jnp.asarray(0.9, jnp.float32)
    out3 = jax.block_until_ready(ts_model_forward(x3, tok3, t3))
    ref3 = jax.nn.softmax(x3.astype(jnp.float32) / t3, axis=1)[jnp.arange(N3), tok3]
    assert jnp.allclose(out3, ref3, atol=2e-3, rtol=2e-3), (out3, ref3)

    print("KERNEL_OK")
</pallas_src>

<mosaic_0001>
module attributes {stable_mosaic.version = 11 : i64} {
  func.func @ts_kernel(%arg0: i32, %arg1: i32, %arg2: memref<1x1xf32, #tpu.memory_space<smem>>, %arg3: memref<8x128xf32, #tpu.memory_space<vmem>>, %arg4: memref<8x1xi32, #tpu.memory_space<vmem>>, %arg5: memref<8x1xf32, #tpu.memory_space<vmem>>, %arg6: memref<8x1xf32, #tpu.memory_space<vmem>>, %arg7: memref<8x1xf32, #tpu.memory_space<vmem>>, %arg8: memref<8x1xf32, #tpu.memory_space<vmem>>) attributes {dimension_semantics = [#tpu.dimension_semantics<parallel>, #tpu.dimension_semantics<arbitrary>], iteration_bounds = array<i64: 2, 2>, scalar_prefetch = 0 : i64, scratch_operands = 3 : i64, tpu.core_type = #tpu.core_type<tc>, window_params = [{transform_indices = @transform_0, window_bounds = array<i64: 1, 1>}, {transform_indices = @transform_1, window_bounds = array<i64: 8, 128>}, {transform_indices = @transform_2, window_bounds = array<i64: 8, 1>}, {transform_indices = @transform_3, window_bounds = array<i64: 8, 1>}]} {
    %c0 = arith.constant 0 : index
    %c0_0 = arith.constant 0 : index
    %0 = memref.load %arg2[%c0, %c0_0] : memref<1x1xf32, #tpu.memory_space<smem>>
    %cst = arith.constant 1.000000e+00 : f32
    %1 = arith.divf %cst, %0 : f32
    %c0_i32 = arith.constant 0 : i32
    %2 = arith.cmpi eq, %arg1, %c0_i32 : i32
    %3 = arith.extui %2 : i1 to i32
    %c0_i32_1 = arith.constant 0 : i32
    %4 = arith.cmpi ne, %3, %c0_i32_1 : i32
    scf.if %4 {
      %cst_23 = arith.constant 0xFF800000 : f32
      %42 = vector.broadcast %cst_23 : f32 to vector<8x1xf32>
      %c0_24 = arith.constant 0 : index
      %c0_25 = arith.constant 0 : index
      %43 = vector.load %arg6[%c0_24, %c0_25] : memref<8x1xf32, #tpu.memory_space<vmem>>, vector<8x1xf32>
      tpu.vector_store %arg6[%c0_24, %c0_25], %42 {strides = array<i32>} : memref<8x1xf32, #tpu.memory_space<vmem>>, vector<8x1xf32>,
      %cst_26 = arith.constant 0.000000e+00 : f32
      %44 = vector.broadcast %cst_26 : f32 to vector<8x1xf32>
      %c0_27 = arith.constant 0 : index
      %c0_28 = arith.constant 0 : index
      %45 = vector.load %arg7[%c0_27, %c0_28] : memref<8x1xf32, #tpu.memory_space<vmem>>, vector<8x1xf32>
      tpu.vector_store %arg7[%c0_27, %c0_28], %44 {strides = array<i32>} : memref<8x1xf32, #tpu.memory_space<vmem>>, vector<8x1xf32>,
      %cst_29 = arith.constant 0.000000e+00 : f32
      %46 = vector.broadcast %cst_29 : f32 to vector<8x1xf32>
      %c0_30 = arith.constant 0 : index
      %c0_31 = arith.constant 0 : index
      %47 = vector.load %arg8[%c0_30, %c0_31] : memref<8x1xf32, #tpu.memory_space<vmem>>, vector<8x1xf32>
      tpu.vector_store %arg8[%c0_30, %c0_31], %46 {strides = array<i32>} : memref<8x1xf32, #tpu.memory_space<vmem>>, vector<8x1xf32>,
    } else {
    }
    %c0_2 = arith.constant 0 : index
    %c0_3 = arith.constant 0 : index
    %5 = vector.load %arg3[%c0_2, %c0_3] : memref<8x128xf32, #tpu.memory_space<vmem>>, vector<8x128xf32>
    %6 = vector.broadcast %1 : f32 to vector<8x128xf32>
    %7 = arith.mulf %5, %6 : vector<8x128xf32>
    %c128_i32 = arith.constant 128 : i32
    %8 = arith.muli %arg1, %c128_i32 : i32
    %9 = tpu.iota {dimensions = array<i32: 1>} : vector<8x128xi32>
    %10 = vector.broadcast %8 : i32 to vector<8x128xi32>
    %11 = arith.addi %10, %9 : vector<8x128xi32>
    %c0_4 = arith.constant 0 : index
    %c0_5 = arith.constant 0 : index
    %12 = vector.load %arg6[%c0_4, %c0_5] : memref<8x1xf32, #tpu.memory_space<vmem>>, vector<8x1xf32>
    %cst_6 = arith.constant dense<0xFF800000> : vector<8xf32>
    %13 = vector.multi_reduction <maximumf>, %7, %cst_6 [1] : vector<8x128xf32> to vector<8xf32>
    %14 = vector.shape_cast %13 : vector<8xf32> to vector<8x1xf32>
    %15 = arith.maximumf %12, %14 : vector<8x1xf32>
    %16 = arith.subf %12, %15 : vector<8x1xf32>
    %17 = math.exp %16 : vector<8x1xf32>
    %18 = vector.broadcast %15 : vector<8x1xf32> to vector<8x128xf32>
    %19 = arith.subf %7, %18 : vector<8x128xf32>
    %20 = math.exp %19 : vector<8x128xf32>
    %c0_7 = arith.constant 0 : index
    %c0_8 = arith.constant 0 : index
    %21 = vector.load %arg4[%c0_7, %c0_8] : memref<8x1xi32, #tpu.memory_space<vmem>>, vector<8x1xi32>
    %22 = vector.broadcast %21 : vector<8x1xi32> to vector<8x128xi32>
    %23 = arith.cmpi eq, %11, %22 : vector<8x128xi32>
    %c0_9 = arith.constant 0 : index
    %c0_10 = arith.constant 0 : index
    %24 = vector.load %arg7[%c0_9, %c0_10] : memref<8x1xf32, #tpu.memory_space<vmem>>, vector<8x1xf32>
    %25 = arith.mulf %17, %24 : vector<8x1xf32>
    %cst_11 = arith.constant dense<0.000000e+00> : vector<8xf32>
    %26 = vector.multi_reduction <add>, %20, %cst_11 [1] : vector<8x128xf32> to vector<8xf32>
    %27 = vector.shape_cast %26 : vector<8xf32> to vector<8x1xf32>
    %28 = arith.addf %25, %27 : vector<8x1xf32>
    %c0_12 = arith.constant 0 : index
    %c0_13 = arith.constant 0 : index
    %29 = vector.load %arg7[%c0_12, %c0_13] : memref<8x1xf32, #tpu.memory_space<vmem>>, vector<8x1xf32>
    tpu.vector_store %arg7[%c0_12, %c0_13], %28 {strides = array<i32>} : memref<8x1xf32, #tpu.memory_space<vmem>>, vector<8x1xf32>,
    %c0_14 = arith.constant 0 : index
    %c0_15 = arith.constant 0 : index
    %30 = vector.load %arg8[%c0_14, %c0_15] : memref<8x1xf32, #tpu.memory_space<vmem>>, vector<8x1xf32>
    %31 = arith.mulf %17, %30 : vector<8x1xf32>
    %cst_16 = arith.constant 0.000000e+00 : f32
    %32 = vector.broadcast %cst_16 : f32 to vector<8x128xf32>
    %33 = arith.select %23, %20, %32 : vector<8x128xi1>, vector<8x128xf32>
    %cst_17 = arith.constant dense<0.000000e+00> : vector<8xf32>
    %34 = vector.multi_reduction <add>, %33, %cst_17 [1] : vector<8x128xf32> to vector<8xf32>
    %35 = vector.shape_cast %34 : vector<8xf32> to vector<8x1xf32>
    %36 = arith.addf %31, %35 : vector<8x1xf32>
    %c0_18 = arith.constant 0 : index
    %c0_19 = arith.constant 0 : index
    %37 = vector.load %arg8[%c0_18, %c0_19] : memref<8x1xf32, #tpu.memory_space<vmem>>, vector<8x1xf32>
    tpu.vector_store %arg8[%c0_18, %c0_19], %36 {strides = array<i32>} : memref<8x1xf32, #tpu.memory_space<vmem>>, vector<8x1xf32>,
    %c0_20 = arith.constant 0 : index
    %c0_21 = arith.constant 0 : index
    %38 = vector.load %arg6[%c0_20, %c0_21] : memref<8x1xf32, #tpu.memory_space<vmem>>, vector<8x1xf32>
    tpu.vector_store %arg6[%c0_20, %c0_21], %15 {strides = array<i32>} : memref<8x1xf32, #tpu.memory_space<vmem>>, vector<8x1xf32>,
    %c1_i32 = arith.constant 1 : i32
    %39 = arith.cmpi eq, %arg1, %c1_i32 : i32
    %40 = arith.extui %39 : i1 to i32
    %c0_i32_22 = arith.constant 0 : i32
    %41 = arith.cmpi ne, %40, %c0_i32_22 : i32
    scf.if %41 {
      %c0_23 = arith.constant 0 : index
      %c0_24 = arith.constant 0 : index
      %42 = vector.load %arg8[%c0_23, %c0_24] : memref<8x1xf32, #tpu.memory_space<vmem>>, vector<8x1xf32>
      %c0_25 = arith.constant 0 : index
      %c0_26 = arith.constant 0 : index
      %43 = vector.load %arg7[%c0_25, %c0_26] : memref<8x1xf32, #tpu.memory_space<vmem>>, vector<8x1xf32>
      %44 = arith.divf %42, %43 : vector<8x1xf32>
      %c0_27 = arith.constant 0 : index
      %c0_28 = arith.constant 0 : index
      %45 = vector.load %arg5[%c0_27, %c0_28] : memref<8x1xf32, #tpu.memory_space<vmem>>, vector<8x1xf32>
      tpu.vector_store %arg5[%c0_27, %c0_28], %44 {strides = array<i32>} : memref<8x1xf32, #tpu.memory_space<vmem>>, vector<8x1xf32>,
    } else {
    }
    return
  }
  func.func @transform_0(%arg0: i32, %arg1: i32) -> (i32, i32) {
    %c0_i32 = arith.constant 0 : i32
    %c0_i32_0 = arith.constant 0 : i32
    %c0_i32_1 = arith.constant 0 : i32
    return %c0_i32, %c0_i32_0 : i32, i32
  }
  func.func @transform_1(%arg0: i32, %arg1: i32) -> (i32, i32) {
    %c0_i32 = arith.constant 0 : i32
    return %arg0, %arg1 : i32, i32
  }
  func.func @transform_2(%arg0: i32, %arg1: i32) -> (i32, i32) {
    %c0_i32 = arith.constant 0 : i32
    %c0_i32_0 = arith.constant 0 : i32
    return %arg0, %c0_i32 : i32, i32
  }
  func.func @transform_3(%arg0: i32, %arg1: i32) -> (i32, i32) {
    %c0_i32 = arith.constant 0 : i32
    %c0_i32_0 = arith.constant 0 : i32
    return %arg0, %c0_i32 : i32, i32
  }
}

</mosaic_0001>

<bundles_post_ra>
// kernel: tpu_custom_call.1
= control target key start
LH: loop header
LB: loop body
LE: loop exit
PB: predicated region body
PF: predicated region fallthrough
CT: control target
= control target key end

     0   :  { %s764_s0 = inlined_call_operand.<no memory space> [shape: f32[1,1], index: 0, kind: input, shape index: {}]   ;;  %s765_s1 = inlined_call_operand.hbm [shape: f32[16,256], index: 1, kind: input, shape index: {}]   ;;  %s766_s2 = inlined_call_operand.vmem [shape: s32[16,1], index: 2, kind: input, shape index: {}]   ;;  %s767_s3 = inlined_call_operand.vmem [shape: f32[16,1], index: 3, kind: output, shape index: {}]  }
   0x1   :  { %8 = sst [smem:[#allocation5]] %s764_s0 }
   0x2   :  { %9 = vsyncpa [#allocation7], 0 }
   0x3   :  { %11 = vsyncpa [#allocation7 + $0x1], 0  ;;  %s601_s14 = smov 0   ;;  %s603_s15 = smov 0  }
   0x4   :  { %s605_s16 = smov 0   ;;  %s607_s17 = smov 0  }
   0x5   :  { %s609_s18 = smov 0   ;;  %s611_s19 = smov 0  }
   0x6   :  { %s613_s20 = smov 0   ;;  %s615_s21 = smov 0  }
   0x7 LB: > { %s374_s0 = sadd.s32 4294967295, %s572_s21   ;;  %s26_s22 = sadd.s32 1, %s564_s19  ;;  %s572_s21 = sphi %s615_s21, %s17_s21   ;;  %s568_s20 = sphi %s613_s20, %s779_s20   ;;  %s564_s19 = sphi %s611_s19, %s778_s19   ;;  %s560_s18 = sphi %s609_s18, %s777_s18   ;;  %s556_s17 = sphi %s607_s17, %s776_s17   ;;  %s552_s16 = sphi %s605_s16, %s775_s16   ;;  %s548_s15 = sphi %s603_s15, %s774_s15   ;;  %s544_s14 = sphi %s601_s14, %s773_s14  }
   0x8   : > { %p27_p0 = scmp.ge.s32.totalorder %s26_s22, 2  ;;  %s29_s23 = sadd.s32 1, %s568_s20 }
   0x9   : > { %s59_s24 = sadd.s32 1, %s552_s16  ;;  %p66_p1 = scmp.ne.s32.totalorder %s552_s16, %s548_s15 }
   0xa   : > { %s781_s22 = smov (%p27_p0, %s26_s22), 0  ;;  %s783_s23 = smov (!%p27_p0, %s29_s23), %s568_s20 }
   0xb   : > { %s55_s25 = ssub.s32 %s564_s19, %s781_s22  ;;  %p67_p2 = scmp.eq.s32.totalorder %s572_s21, 0 }
   0xc   : > { %p31_p3 = scmp.ge.s32.totalorder %s783_s23, 2  ;;  %p72_p4 = scmp.ne.s32.totalorder %s548_s15, %s544_s14 }
   0xd   : > { %p652_p5 = por %p67_p2, %p66_p1  ;;  %p73_p6 = scmp.eq.s32.totalorder %s374_s0, 0 }
   0xe   : > { %s785_s23 = smov (%p31_p3, %s783_s23), 0  ;;  %p398_p8 = scmp.lt.s32.totalorder %s572_s21, 4 }
   0xf   : > { %p658_p7 = por %p73_p6, %p72_p4  ;;  %s54_s28 = ssub.s32 %s568_s20, %s785_s23 }
  0x10   : > { %s56_s29 = sor.u32 %s55_s25, %s54_s28  ;;  %s151_s30 = sand.u32 1, %s552_s16  }
  0x11   : > { %p57_p9 = scmp.eq.s32.totalorder %s56_s29, 0  ;;  %s378_s4 = sshll.u32 %s151_s30, 3 }
  0x12   : > { %s379_s5 = sshll.u32 %s568_s20, 1  ;;  %s155_s9 = scalar_lea.vmem [#allocation6], %s378_s4 }
  0x13   : > { %s668_s6 = scalar_select %p57_p9, %s552_s16, %s59_s24  }
  0x14   : > { %s160_s7 = sadd.s32 %s564_s19, %s379_s5  ;;  %s164_s10 = sshll.u32 %s155_s9, 4  ;;  %s676_s10 = int_to_ptr.vmem [resolvable:$true] %s164_s10 }
  0x15   : > { %s380_s8 = sshll.u32 %s160_s7, 7  ;;  %p682_p10 = pnand %p398_p8, %p652_p5 }
  0x16   : > { %s674_s13 = scalar_lea.hbm %s765_s1, %s380_s8  ;;  %s152_s0 = scalar_lea.sflag [#allocation7], %s151_s30 }
  0x17   : > { %s476_s24 = scalar_lea.hbm %s674_s13, 128  ;;  %p478_p0 = pneg %p682_p10 }
  0x18   : > { %p477_p13 = scmp.ne.s32.totalorder %s674_s13, %s476_s24  ;;  %s481_s28 = scalar_lea.hbm %s765_s1, 512 }
  0x19   : > { %p482_p3 = scmp.lt.u32.totalorder %s674_s13, %s765_s1  ;;  %p483_p4 = scmp.lt.u32.totalorder %s481_s28, %s476_s24 }
  0x1a   : > { %p479_p1 = pnand %p478_p0, %p477_p13  ;;  %p485_p6 = scmp.lt.u32.totalorder %s476_s24, %s674_s13 }
  0x1b   : > { %p484_p5 = por %p483_p4, %p482_p3 }
  0x1c   : > { %p480_p2 = pneg %p479_p1 }
  0x1d   : > { %p486_p8 = por %p485_p6, %p484_p5 }
  0x1f   : > { %p487_p9 = pnand %p486_p8, %p480_p2 }
  0x21   : > { %490 = shalt.err (!%p487_p9)
}
  0x22   : > { %s491_s30 = scalar_lea.vmem %s676_s10, 128  ;;  %s574_s5 = smov [#allocation6]  }
  0x23   : > { %p492_p13 = scmp.ne.s32.totalorder %s676_s10, %s491_s30  ;;  %s496_s7 = sshll.u32 %s574_s5, 4  ;;  %s497_s7 = int_to_ptr.vmem [resolvable:$false] %s496_s7 }
  0x24   : > { %s498_s8 = scalar_lea.vmem %s497_s7, 256  ;;  %p499_p12 = scmp.lt.s32.totalorder %s676_s10, %s497_s7 }
  0x25   : > { %p494_p1 = pnand %p492_p13, %p478_p0  ;;  %p500_p3 = scmp.lt.s32.totalorder %s498_s8, %s491_s30 }
  0x27   : > { %p495_p11 = pneg %p494_p1  ;;  %p501_p4 = por %p500_p3, %p499_p12 }
  0x29   : > { %p502_p5 = pnand %p501_p4, %p495_p11 }
  0x2b   : > { %505 = shalt.err (!%p502_p5)
}
  0x2c   : > { %397 = dma.hbm_to_vmem [thread:$0]  (!%p682_p10), %s674_s13, 128, %s676_s10, %s152_s0  }
  0x2d   : > { %p771_p2 = scmp.lt.s32.totalorder %s572_s21, 5  ;;  %p772_p6 = scmp.ge.s32.totalorder %s572_s21, 1 }
  0x2f   : > { %p177_p0 = pnand %p772_p6, %p771_p2 }
  0x30   : > { %s182_s9 = sand.u32 (!%p177_p0), 1, %s548_s15  }
  0x31   : > { %180 = sbr.rel (%p177_p0) target bundleno = 581 (0x245), region = 32  ;;  %s382_s11 = sshll.u32 (!%p177_p0), %s182_s9, 3 }
  0x32   : > { %s183_s12 = scalar_lea.sflag (!%p177_p0), [#allocation7], %s182_s9  ;;  %s186_s24 = scalar_lea.vmem (!%p177_p0), [#allocation6], %s382_s11 }
  0x38   : > { %539 = dma.done.wait (%p658_p7), %s183_s12, 128  }
  0x39   : > { %541 = vsyncadd (%p658_p7), %s183_s12, 4294967168  ;;  %p212_p11 = scmp.lt.s32.totalorder %s560_s18, 1  ;;  %s220_s14 = sld [smem:[#allocation5]] }
  0x3a   : > { %p385_p7 = scmp.ne.s32.totalorder %s556_s17, 0 }
  0x3b   : > { %s787_s18 = smov (!%p212_p11, %s560_s18), 1  ;;  %vm228_vm0 = vcmask (!%p385_p7), 7168   ;;  %v575_v2 = vmov (!%p385_p7), -inf   ;;  %v576_v3 = vmov (!%p385_p7), 0.0  }
  0x3c   : > { %s383_s10 = sshll.u32 %s787_s18, 3  ;;  %229 = vst.msk [vmem:[#allocation2] sm:$0xff] (!%p385_p7), %vm228_vm0, %v575_v2  ;;  %230 = vst.msk [vmem:[#allocation3] sm:$0xff] (!%p385_p7), %vm228_vm0, %v576_v3 }
  0x3d   : > { %s215_s25 = scalar_lea.vmem %s766_s2, %s383_s10  ;;  %s730_s29 = scalar_lea.vmem %s767_s3, %s383_s10  ;;  %231 = vst.msk [vmem:[#allocation4] sm:$0xff] (!%p385_p7), %vm228_vm0, %v576_v3 }
  0x3f   : > { %v221_v0 = vstv %s220_s14 }
  0x40   : > { %466 = vrcp.f32 %v221_v0 }
  0x4a   : > { %v467_v1 = vpop.eup %466 }
  0x4b   : > { %390 = vpush %v467_v1 }
  0x76   : > { %227 = sbr.rel (%p385_p7) target bundleno = 125 (0x7d), region = 40 }
  0x7c   : > { %s391_s27 = spop %390 }
  0x7d PF: > { %v232_v4 = vld [vmem:[%s186_s24] sm:$0xff]  ;;  %v233_v5 = vstv %s391_s27  ;;  %v577_v7 = vmov 0   ;;  %vm265_vm1 = vcmask 7168   ;;  %v236_v16 = vlaneseq  ;;  %s386_s18 = sshll.u32 %s556_s17, 7  ;;  %v260_v25 = vld [vmem:[#allocation3] sm:$0xff]  ;;  %v267_v28 = vld [vmem:[#allocation4] sm:$0xff] }
  0x7e   : > { %v234_v6 = vmul.f32 %v233_v5, %v232_v4  ;;  %468 = vset.pattern.permute.xlu0 %v577_v7  ;;  %469 = vset.pattern.permute.xlu1 %v577_v7  ;;  %v255_v8 = vld [vmem:[%s215_s25] sm:$0xff]  ;;  %v238_v18 = vstv %s386_s18  ;;  %p387_p10 = scmp.ne.s32.totalorder %s556_s17, 1 }
  0x7f   : > { %257 = vperm.xlu1 %469, %v255_v8   ;;  %v240_v9 = vld [vmem:[#allocation2] sm:$0xff]  ;;  %v237_v17 = vand.u32 127, %v236_v16 }
  0x80   : > { %241 = vmax.xlane.f32.xlu0 %v234_v6 }
  0x81   : > { %v239_v19 = vadd.s32 %v238_v18, %v237_v17 }
  0xfe   : > { %v258_v20 = vpop.permute.xlu1 %257 }
  0xff   : > { %vm259_vm2 = vcmp.eq.s32.totalorder %v239_v19, %v258_v20 }
 0x10d   : > { %v242_v10 = vpop.xlane.xlu0 %241 }
 0x10e   : > { %v243_v11 = vmax.f32 %v240_v9, %v242_v10 }
 0x110   : > { %v244_v12 = vsub.f32 %v240_v9, %v243_v11  ;;  %274 = vst.msk [vmem:[#allocation2] sm:$0xff] %vm265_vm1, %v243_v11  ;;  %249 = vperm.xlu0 %468, %v243_v11  }
 0x112   : > { %v245_v23 = vmul.f32 1.442695, %v244_v12 }
 0x18f   : > { %v250_v13 = vpop.permute.xlu0 %249 }
 0x190   : > { %v252_v14 = vsub.f32 %v234_v6, %v250_v13 }
 0x192   : > { %v253_v15 = vmul.f32 1.442695, %v252_v14 }
 0x194   : > { %470 = vpow2.f32 %v253_v15 }
 0x195   : > { %472 = vpow2.f32 %v245_v23 }
 0x19e   : > { %v471_v21 = vpop.eup %470 }
 0x19f   : > { %262 = vadd.xlane.f32.xlu1 %v471_v21  ;;  %v269_v22 = vsel %vm259_vm2, %v471_v21, 0.0  ;;  %v473_v24 = vpop.eup %472 }
 0x1a0   : > { %v261_v26 = vmul.f32 %v473_v24, %v260_v25  ;;  %v268_v30 = vmul.f32 %v473_v24, %v267_v28 }
 0x1a3   : > { %270 = vadd.xlane.f32.xlu1 %v269_v22 }
 0x22c   : > { %v263_v27 = vpop.xlane.xlu1 %262 }
 0x22d   : > { %v264_v29 = vadd.f32 %v263_v27, %v261_v26  ;;  %278 = sbr.rel (%p387_p10) target bundleno = 581 (0x245), region = 44 }
 0x22f   : > { %266 = vst.msk [vmem:[#allocation3] sm:$0xff] %vm265_vm1, %v264_v29 }
 0x230   : > { %v271_v31 = vpop.xlane.xlu1 %270 }
 0x231   : > { %v272_v32 = vadd.f32 %v271_v31, %v268_v30 }
 0x233   : > { %273 = vst.msk [vmem:[#allocation4] sm:$0xff] %vm265_vm1, %v272_v32 }
 0x236   : > { %v280_v33 = vld [vmem:[#allocation3] sm:$0xff] }
 0x237   : > { %474 = vrcp.f32 %v280_v33 }
 0x23a   : > { %v279_v34 = vld [vmem:[#allocation4] sm:$0xff] }
 0x241   : > { %v475_v35 = vpop.eup %474 }
 0x242   : > { %v282_v36 = vmul.f32 %v475_v35, %v279_v34 }
 0x244   : > { %283 = vst.msk [vmem:[%s730_s29] sm:$0xff] %vm265_vm1, %v282_v36 }
 0x245 PF: > { %s17_s21 = sadd.s32 1, %s572_s21   ;;  %s773_s14 = smov %s548_s15 }
 0x246   : > { %p14_p12 = scmp.ge.s32.totalorder %s17_s21, 6   ;;  %s774_s15 = smov %s552_s16 }
 0x247   : > { %s775_s16 = smov %s668_s6  ;;  %s776_s17 = smov %s564_s19 }
 0x248   : > { %s777_s18 = smov %s568_s20  ;;  %s778_s19 = smov %s781_s22 }
 0x249   : > { %s779_s20 = smov %s785_s23  ;;  %16 = sbr.rel (!%p14_p12) target bundleno = 7 (0x7), region = 83 }
 0x250   :  { %303 = vsyncpa [#allocation7], 1 }
 0x251   :  { %305 = vsyncpa [#allocation7 + $0x1], 1 }

</bundles_post_ra>
